<compile_context>
chip_gen: v6e
topology: v6e:2x2x1
jax: 0.10.0
libtpu: 0.0.40
codegen_flags: <defaults>
</compile_context>

<pallas_src>
import math

import jax
import jax.numpy as jnp
from jax.experimental import pallas as pl
from jax.experimental.pallas import tpu as pltpu


# ---------------------------------------------------------------------------
# Kernels
# ---------------------------------------------------------------------------

def swiglu_kernel_f32out(x_ref, wgu_ref, bgu_ref, wd_ref, bd_ref, o_ref):
    """Grid step for f32 outputs: accumulate straight into the resident o_ref block.

    x_ref  : (tm, C)        bf16 input rows (cast at the call boundary)
    wgu_ref: (1, C, 2*ti)   bf16 fused [gate | up] weight tile (pre-tiled, contiguous)
    bgu_ref: (1, 1, 2*ti)   f32 fused [gate | up] bias tile
    wd_ref : (ti, C)        bf16 down-projection weight slice
    bd_ref : (1, C)         f32 down-projection bias
    o_ref  : (tm, C)        f32 output rows, resident across the i (reduction) axis
    """
    i = pl.program_id(1)
    ti = wd_ref.shape[0]

    x = x_ref[...]                                                      # (tm, C) bf16
    # Fused gate/up projection: one MXU contraction, f32 accumulate.
    gu = jnp.dot(x, wgu_ref[0], preferred_element_type=jnp.float32) + bgu_ref[0]
    g = gu[:, :ti]
    u = gu[:, ti:]
    # SiLU(gate) * up in f32 (sigmoid on the EUP, mul on the VPU).
    h = jax.nn.silu(g) * u

    @pl.when(i == 0)
    def _():
        # Initialize the resident output block with the down-projection bias.
        o_ref[...] = jnp.broadcast_to(bd_ref[...], o_ref.shape)

    o_ref[...] += jnp.dot(h.astype(jnp.bfloat16), wd_ref[...],
                          preferred_element_type=jnp.float32)


def swiglu_kernel_accum(x_ref, wgu_ref, bgu_ref, wd_ref, bd_ref, o_ref, acc_ref):
    """Grid step for non-f32 outputs: f32 VMEM scratch accumulator, cast at finalize."""
    i = pl.program_id(1)
    ti = wd_ref.shape[0]

    @pl.when(i == 0)
    def _():
        acc_ref[...] = jnp.zeros_like(acc_ref)

    x = x_ref[...]
    gu = jnp.dot(x, wgu_ref[0], preferred_element_type=jnp.float32) + bgu_ref[0]
    g = gu[:, :ti]
    u = gu[:, ti:]
    h = jax.nn.silu(g) * u
    acc_ref[...] += jnp.dot(h.astype(jnp.bfloat16), wd_ref[...],
                            preferred_element_type=jnp.float32)

    @pl.when(i == pl.num_programs(1) - 1)
    def _():
        o_ref[...] = (acc_ref[...] + bd_ref[...]).astype(o_ref.dtype)


# ---------------------------------------------------------------------------
# Wrapper
# ---------------------------------------------------------------------------

_MIB = 1024 * 1024


def _vmem_capacity_bytes():
    try:
        return int(pltpu.get_tpu_info().vmem_capacity_bytes)
    except Exception:
        return 64 * _MIB  # conservative (v7x per-TC) fallback


def _pick_block_m(M, target, row_align=16):
    """Largest row tile <= target, multiple of row_align; prefer >=2 row tiles."""
    bm = min(target, M)
    if M >= 2 * row_align:
        # Keep at least 2 row tiles so the "parallel" m axis feeds both TCs / megacore.
        bm = min(bm, (M // 2 // row_align) * row_align)
    bm = (bm // row_align) * row_align
    return max(row_align, bm)


def _pick_block_i(I, target):
    """Largest multiple of 128 <= target that divides I; else the full extent."""
    if I % 128 != 0 or I < 128:
        return I
    bi = max(128, (min(target, I) // 128) * 128)
    while bi > 128 and I % bi != 0:
        bi -= 128
    return bi if I % bi == 0 else I


def swiglu(x, w_gate, b_gate, w_up, b_up, w_down, b_down,
           *, block_m=None, block_i=None):
    """x: (B, T, C).  w_gate/w_up: (C, I), w_down: (I, C).  Returns (B, T, C)."""
    B, T, C = x.shape
    I = w_gate.shape[1]
    M = B * T

    cap = _vmem_capacity_bytes()

    # Generation-aware tile targets: weight reuse scales with block_m; shrink block_i
    # on 64 MiB-VMEM parts (v7x), keep it larger where 128 MiB is available.
    if block_m is None:
        block_m = 512
    if block_i is None:
        block_i = 256 if cap <= 64 * _MIB else 512

    block_m = _pick_block_m(M, block_m, row_align=16)   # bf16 x -> 16-row sublane pack
    block_i = _pick_block_i(I, block_i)
    n_i = I // block_i

    out_dtype = x.dtype
    f32_out = jnp.dtype(out_dtype) == jnp.dtype(jnp.float32)

    # --- Activations: cast to bf16 at the boundary; pad M to a clean tile count. ---
    x2 = x.reshape(M, C).astype(jnp.bfloat16)
    M_pad = pl.cdiv(M, block_m) * block_m
    if M_pad != M:
        x2 = jnp.pad(x2, ((0, M_pad - M), (0, 0)))
    grid = (M_pad // block_m, n_i)

    # --- Weights: fuse gate|up and pre-tile to (n_i, C, 2*bi) contiguous blocks. ---
    wg_t = w_gate.reshape(C, n_i, block_i).transpose(1, 0, 2)   # (n_i, C, bi)
    wu_t = w_up.reshape(C, n_i, block_i).transpose(1, 0, 2)     # (n_i, C, bi)
    wgu = jnp.concatenate([wg_t, wu_t], axis=-1).astype(jnp.bfloat16)  # (n_i, C, 2*bi)

    bg_t = b_gate.reshape(n_i, block_i)
    bu_t = b_up.reshape(n_i, block_i)
    bgu = jnp.concatenate([bg_t, bu_t], axis=-1).reshape(n_i, 1, 2 * block_i)
    bgu = bgu.astype(jnp.float32)

    wd = w_down.astype(jnp.bfloat16)                            # (I, C)
    bd = b_down.reshape(1, C).astype(jnp.float32)

    # --- VMEM budget (true footprint: double-buffered blocks + scratch). ---
    out_itemsize = jnp.dtype(out_dtype).itemsize
    blk_bytes = (
        2 * block_m * C * 2                 # x block (bf16, double-buffered)
        + 2 * C * (2 * block_i) * 2         # fused gate/up weight block (bf16)
        + 2 * (2 * block_i) * 4             # fused gate/up bias block (f32)
        + 2 * block_i * C * 2               # down weight block (bf16)
        + 2 * C * 4                         # down bias (f32)
        + 2 * block_m * C * out_itemsize    # output block (double-buffered)
    )
    scratch_shapes = []
    kernel = swiglu_kernel_f32out
    if not f32_out:
        blk_bytes += block_m * C * 4        # f32 accumulator scratch
        scratch_shapes = [pltpu.VMEM((block_m, C), jnp.float32)]
        kernel = swiglu_kernel_accum

    vmem_limit = int(min(cap - cap // 8, max(32 * _MIB, (blk_bytes * 5) // 4)))

    out = pl.pallas_call(
        kernel,
        out_shape=jax.ShapeDtypeStruct((M_pad, C), out_dtype),
        grid_spec=pltpu.PrefetchScalarGridSpec(
            num_scalar_prefetch=0,
            grid=grid,
            in_specs=[
                pl.BlockSpec((block_m, C), lambda m, i: (m, 0)),           # x rows
                pl.BlockSpec((1, C, 2 * block_i), lambda m, i: (i, 0, 0)),  # fused w
                pl.BlockSpec((1, 1, 2 * block_i), lambda m, i: (i, 0, 0)),  # fused b
                pl.BlockSpec((block_i, C), lambda m, i: (i, 0)),           # w_down
                pl.BlockSpec((1, C), lambda m, i: (0, 0)),                 # b_down
            ],
            out_specs=pl.BlockSpec((block_m, C), lambda m, i: (m, 0)),
            scratch_shapes=scratch_shapes,
        ),
        compiler_params=pltpu.CompilerParams(
            dimension_semantics=("parallel", "arbitrary"),
            vmem_limit_bytes=vmem_limit,
        ),
    )(x2, wgu, bgu, wd, bd)

    if M_pad != M:
        out = out[:M]
    return out.reshape(B, T, C)


# ---------------------------------------------------------------------------
# Reference (pure JAX, mirrors the kernel's bf16 matmul / f32 accumulate)
# ---------------------------------------------------------------------------

def reference(x, w_gate, b_gate, w_up, b_up, w_down, b_down):
    B, T, C = x.shape
    xb = x.reshape(B * T, C).astype(jnp.bfloat16)
    g = jnp.dot(xb, w_gate.astype(jnp.bfloat16),
                preferred_element_type=jnp.float32) + b_gate.reshape(1, -1)
    u = jnp.dot(xb, w_up.astype(jnp.bfloat16),
                preferred_element_type=jnp.float32) + b_up.reshape(1, -1)
    h = jax.nn.silu(g) * u
    y = jnp.dot(h.astype(jnp.bfloat16), w_down.astype(jnp.bfloat16),
                preferred_element_type=jnp.float32) + b_down.reshape(1, -1)
    return y.reshape(B, T, C).astype(x.dtype)


if __name__ == "__main__":
    # Small shapes consistent with the module: batch=2, seq=16, n_embd=32,
    # intermediate_size=256.  block_m=16 / block_i=128 give 2 row tiles x 2 i-tiles,
    # exercising both the parallel axis and the resident-output reduction.
    B, T, C, I = 2, 16, 32, 256

    key = jax.random.PRNGKey(0)
    k_x, k_wg, k_bg, k_wu, k_bu, k_wd, k_bd = jax.random.split(key, 7)

    x = jax.random.normal(k_x, (B, T, C), dtype=jnp.float32)
    w_gate = jax.random.normal(k_wg, (C, I), dtype=jnp.float32) / math.sqrt(C)
    b_gate = jax.random.normal(k_bg, (I,), dtype=jnp.float32) * 0.02
    w_up = jax.random.normal(k_wu, (C, I), dtype=jnp.float32) / math.sqrt(C)
    b_up = jax.random.normal(k_bu, (I,), dtype=jnp.float32) * 0.02
    w_down = jax.random.normal(k_wd, (I, C), dtype=jnp.float32) / math.sqrt(I)
    b_down = jax.random.normal(k_bd, (C,), dtype=jnp.float32) * 0.02

    out = swiglu(x, w_gate, b_gate, w_up, b_up, w_down, b_down,
                 block_m=16, block_i=128)
    out = jax.block_until_ready(out)

    ref = reference(x, w_gate, b_gate, w_up, b_up, w_down, b_down)
    assert out.shape == (B, T, C)
    err = float(jnp.max(jnp.abs(out - ref)))
    assert jnp.allclose(out, ref, atol=2e-2, rtol=2e-2), f"mismatch, max abs err={err}"

    print("KERNEL_OK")
</pallas_src>

<mosaic_0001>
module attributes {stable_mosaic.version = 11 : i64} {
  func.func @swiglu_kernel_f32out(%arg0: i32, %arg1: i32, %arg2: memref<16x32xbf16, #tpu.memory_space<vmem>>, %arg3: memref<1x32x256xbf16, #tpu.memory_space<vmem>>, %arg4: memref<1x1x256xf32, #tpu.memory_space<vmem>>, %arg5: memref<128x32xbf16, #tpu.memory_space<vmem>>, %arg6: memref<1x32xf32, #tpu.memory_space<vmem>>, %arg7: memref<16x32xf32, #tpu.memory_space<vmem>>) attributes {dimension_semantics = [#tpu.dimension_semantics<parallel>, #tpu.dimension_semantics<arbitrary>], iteration_bounds = array<i64: 2, 2>, scalar_prefetch = 0 : i64, scratch_operands = 0 : i64, tpu.core_type = #tpu.core_type<tc>, window_params = [{transform_indices = @transform_0, window_bounds = array<i64: 16, 32>}, {transform_indices = @transform_1, window_bounds = array<i64: 1, 32, 256>}, {transform_indices = @transform_2, window_bounds = array<i64: 1, 1, 256>}, {transform_indices = @transform_3, window_bounds = array<i64: 128, 32>}, {pipeline_mode = #tpu.pipeline_mode<synchronous>, transform_indices = @transform_4, window_bounds = array<i64: 1, 32>}, {transform_indices = @transform_5, window_bounds = array<i64: 16, 32>}]} {
    %c0 = arith.constant 0 : index
    %c0_0 = arith.constant 0 : index
    %0 = vector.load %arg2[%c0, %c0_0] : memref<16x32xbf16, #tpu.memory_space<vmem>>, vector<16x32xbf16>
    %c0_1 = arith.constant 0 : index
    %c0_2 = arith.constant 0 : index
    %c0_3 = arith.constant 0 : index
    %1 = vector.load %arg3[%c0_1, %c0_2, %c0_3] : memref<1x32x256xbf16, #tpu.memory_space<vmem>>, vector<1x32x256xbf16>
    %2 = vector.shape_cast %1 : vector<1x32x256xbf16> to vector<32x256xbf16>
    %cst = arith.constant dense<0.000000e+00> : vector<16x256xf32>
    %3 = tpu.matmul %0, %2, %cst {dimension_numbers = #tpu.dot_dimension_numbers<[1], [0], [0], [1], [0, 0, 1, 1], [], []>} : vector<16x32xbf16>, vector<32x256xbf16>, vector<16x256xf32> -> vector<16x256xf32>
    %c0_4 = arith.constant 0 : index
    %c0_5 = arith.constant 0 : index
    %c0_6 = arith.constant 0 : index
    %4 = vector.load %arg4[%c0_4, %c0_5, %c0_6] : memref<1x1x256xf32, #tpu.memory_space<vmem>>, vector<1x1x256xf32>
    %5 = vector.shape_cast %4 : vector<1x1x256xf32> to vector<1x256xf32>
    %6 = vector.broadcast %5 : vector<1x256xf32> to vector<16x256xf32>
    %7 = arith.addf %3, %6 : vector<16x256xf32>
    %8 = vector.extract_strided_slice %7 {offsets = [0, 0], sizes = [16, 128], strides = [1, 1]} : vector<16x256xf32> to vector<16x128xf32>
    %9 = vector.extract_strided_slice %7 {offsets = [0, 128], sizes = [16, 128], strides = [1, 1]} : vector<16x256xf32> to vector<16x128xf32>
    %10 = arith.negf %8 : vector<16x128xf32>
    %11 = math.exp %10 : vector<16x128xf32>
    %cst_7 = arith.constant 1.000000e+00 : f32
    %12 = vector.broadcast %cst_7 : f32 to vector<16x128xf32>
    %13 = arith.addf %12, %11 : vector<16x128xf32>
    %14 = arith.divf %12, %13 : vector<16x128xf32>
    %15 = arith.mulf %8, %14 : vector<16x128xf32>
    %16 = arith.mulf %15, %9 : vector<16x128xf32>
    %c0_i32 = arith.constant 0 : i32
    %17 = arith.cmpi eq, %arg1, %c0_i32 : i32
    %18 = arith.extui %17 : i1 to i32
    %c0_i32_8 = arith.constant 0 : i32
    %19 = arith.cmpi ne, %18, %c0_i32_8 : i32
    scf.if %19 {
      %c0_16 = arith.constant 0 : index
      %c0_17 = arith.constant 0 : index
      %26 = vector.load %arg6[%c0_16, %c0_17] : memref<1x32xf32, #tpu.memory_space<vmem>>, vector<1x32xf32>
      %27 = vector.shape_cast %26 : vector<1x32xf32> to vector<1x32xf32>
      %28 = vector.broadcast %27 : vector<1x32xf32> to vector<16x32xf32>
      %c0_18 = arith.constant 0 : index
      %c0_19 = arith.constant 0 : index
      %29 = vector.load %arg7[%c0_18, %c0_19] : memref<16x32xf32, #tpu.memory_space<vmem>>, vector<16x32xf32>
      tpu.vector_store %arg7[%c0_18, %c0_19], %28 {strides = array<i32>} : memref<16x32xf32, #tpu.memory_space<vmem>>, vector<16x32xf32>,
    } else {
    }
    %c0_9 = arith.constant 0 : index
    %c0_10 = arith.constant 0 : index
    %20 = vector.load %arg7[%c0_9, %c0_10] : memref<16x32xf32, #tpu.memory_space<vmem>>, vector<16x32xf32>
    %21 = arith.truncf %16 : vector<16x128xf32> to vector<16x128xbf16>
    %c0_11 = arith.constant 0 : index
    %c0_12 = arith.constant 0 : index
    %22 = vector.load %arg5[%c0_11, %c0_12] : memref<128x32xbf16, #tpu.memory_space<vmem>>, vector<128x32xbf16>
    %cst_13 = arith.constant dense<0.000000e+00> : vector<16x32xf32>
    %23 = tpu.matmul %21, %22, %cst_13 {dimension_numbers = #tpu.dot_dimension_numbers<[1], [0], [0], [1], [0, 0, 1, 1], [], []>} : vector<16x128xbf16>, vector<128x32xbf16>, vector<16x32xf32> -> vector<16x32xf32>
    %24 = arith.addf %20, %23 : vector<16x32xf32>
    %c0_14 = arith.constant 0 : index
    %c0_15 = arith.constant 0 : index
    %25 = vector.load %arg7[%c0_14, %c0_15] : memref<16x32xf32, #tpu.memory_space<vmem>>, vector<16x32xf32>
    tpu.vector_store %arg7[%c0_14, %c0_15], %24 {strides = array<i32>} : memref<16x32xf32, #tpu.memory_space<vmem>>, vector<16x32xf32>,
    return
  }
  func.func @transform_0(%arg0: i32, %arg1: i32) -> (i32, i32) {
    %c0_i32 = arith.constant 0 : i32
    %c0_i32_0 = arith.constant 0 : i32
    return %arg0, %c0_i32 : i32, i32
  }
  func.func @transform_1(%arg0: i32, %arg1: i32) -> (i32, i32, i32) {
    %c0_i32 = arith.constant 0 : i32
    %c0_i32_0 = arith.constant 0 : i32
    %c0_i32_1 = arith.constant 0 : i32
    return %arg1, %c0_i32, %c0_i32_0 : i32, i32, i32
  }
  func.func @transform_2(%arg0: i32, %arg1: i32) -> (i32, i32, i32) {
    %c0_i32 = arith.constant 0 : i32
    %c0_i32_0 = arith.constant 0 : i32
    %c0_i32_1 = arith.constant 0 : i32
    return %arg1, %c0_i32, %c0_i32_0 : i32, i32, i32
  }
  func.func @transform_3(%arg0: i32, %arg1: i32) -> (i32, i32) {
    %c0_i32 = arith.constant 0 : i32
    %c0_i32_0 = arith.constant 0 : i32
    return %arg1, %c0_i32 : i32, i32
  }
  func.func @transform_4(%arg0: i32, %arg1: i32) -> (i32, i32) {
    %c0_i32 = arith.constant 0 : i32
    %c0_i32_0 = arith.constant 0 : i32
    %c0_i32_1 = arith.constant 0 : i32
    return %c0_i32, %c0_i32_0 : i32, i32
  }
  func.func @transform_5(%arg0: i32, %arg1: i32) -> (i32, i32) {
    %c0_i32 = arith.constant 0 : i32
    %c0_i32_0 = arith.constant 0 : i32
    return %arg0, %c0_i32 : i32, i32
  }
}

</mosaic_0001>

<bundles_post_ra>
// kernel: tpu_custom_call.1
= control target key start
LH: loop header
LB: loop body
LE: loop exit
PB: predicated region body
PF: predicated region fallthrough
CT: control target
= control target key end

     0   :  { %10 = vsyncpa [#allocation3], 0  ;;  %s1128_s0 = inlined_call_operand.vmem [shape: bf16[32,32], index: 0, kind: input, shape index: {}]   ;;  %s1129_s1 = inlined_call_operand.vmem [shape: bf16[2,32,256], index: 1, kind: input, shape index: {}]   ;;  %s1130_s2 = inlined_call_operand.vmem [shape: f32[2,1,256], index: 2, kind: input, shape index: {}]   ;;  %s1131_s3 = inlined_call_operand.vmem [shape: bf16[256,32], index: 3, kind: input, shape index: {}]   ;;  %s1132_s4 = inlined_call_operand.vmem [shape: f32[1,32], index: 4, kind: input, shape index: {}]   ;;  %s1133_s5 = inlined_call_operand.hbm [shape: f32[32,32], index: 5, kind: output, shape index: {}]  }
   0x1   :  { %12 = vsyncpa [#allocation3 + $0x1], 0  ;;  %s948_s18 = smov 0   ;;  %s950_s19 = smov 0  }
   0x2   :  { %s952_s20 = smov 0   ;;  %s954_s21 = smov 0  }
   0x3   :  { %s956_s22 = smov 0   ;;  %s958_s23 = smov 0  }
   0x4   :  { %s960_s24 = smov 0   ;;  %s962_s25 = smov 0  }
   0x5 LB: > { %1137 = sst [smem:[#allocation5_spill]] %s906_s24  ;;  %s652_s26 = sadd.s32 4294967295, %s910_s25   ;;  %s910_s25 = sphi %s962_s25, %s18_s25   ;;  %s906_s24 = sphi %s960_s24, %s1145_s24   ;;  %s902_s23 = sphi %s958_s23, %s1150_s23   ;;  %s898_s22 = sphi %s956_s22, %s1143_s22   ;;  %s894_s21 = sphi %s954_s21, %s1149_s21   ;;  %s890_s20 = sphi %s952_s20, %s1148_s20   ;;  %s886_s19 = sphi %s950_s19, %s1147_s19   ;;  %s882_s18 = sphi %s948_s18, %s1146_s18  }
   0x6   : > { %s653_s27 = sadd.s32 4294967294, %s910_s25   ;;  %s27_s28 = sadd.s32 1, %s902_s23 }
   0x7   : > { %p28_p0 = scmp.ge.s32.totalorder %s27_s28, 2  ;;  %s30_s29 = sadd.s32 1, %s906_s24 }
   0x8   : > { %p172_p1 = scmp.ne.s32.totalorder %s890_s20, %s886_s19  ;;  %p173_p2 = scmp.eq.s32.totalorder %s652_s26, 3 }
   0x9   : > { %s1152_s28 = smov (%p28_p0, %s27_s28), 0  ;;  %s1154_s29 = smov (!%p28_p0, %s30_s29), %s906_s24 }
   0xa   : > { %1138 = sst [smem:[#allocation6_spill]] %s1152_s28  ;;  %p997_p3 = por %p173_p2, %p172_p1 }
   0xb   : > { %p178_p4 = scmp.ne.s32.totalorder %s886_s19, %s882_s18  ;;  %p32_p5 = scmp.ge.s32.totalorder %s1154_s29, 2 }
   0xc   : > { %p179_p6 = scmp.eq.s32.totalorder %s653_s27, 3  ;;  %p656_p7 = scmp.ge.s32.totalorder %s910_s25, 1 }
   0xd   : > { %p233_p8 = scmp.lt.s32.totalorder %s910_s25, 5  ;;  %s1156_s29 = smov (%p32_p5, %s1154_s29), 0 }
   0xe   : > { %1140 = sst [smem:[#allocation7_spill]] %s1156_s29  ;;  %p1007_p9 = por %p179_p6, %p178_p4 }
   0xf   : > { %p234_p10 = pnand %p656_p7, %p233_p8  ;;  %s159_s7 = ssub.s32 %s906_s24, %s1156_s29 }
  0x10   : > { %s162_s8 = sadd.s32 1, %s890_s20  ;;  %p160_p11 = scmp.eq.s32.totalorder %s159_s7, 0 }
  0x11   : > { %237 = sbr.rel (%p234_p10) target bundleno = 517 (0x205), region = 40  ;;  %s1135_s10 = sand.u32 (!%p234_p10), 1, %s886_s19  }
  0x12   : > { %s1015_s9 = scalar_select %p160_p11, %s890_s20, %s162_s8  }
  0x13   : > { %p281_p12 = scmp.lt.s32.totalorder (!%p234_p10), %s894_s21, 1  ;;  %s1021_s11 = sshll.u32 (!%p234_p10), %s1135_s10, 4 }
  0x14   : > { %s663_s12 = sshll.u32 (!%p234_p10), %s894_s21, 4  ;;  %s658_s15 = sshll.u32 (!%p234_p10), %s898_s22, 1 }
  0x15   : > { %p291_p13 = scmp.lt.s32.totalorder (!%p234_p10), %s663_s12, 31  ;;  %p276_p0 = scmp.lt.s32.totalorder (!%p234_p10), %s658_s15, 3 }
  0x16   : > { %v912_v0 = vmov 0   ;;  %s282_s13 = scalar_select %p281_p12, %s894_s21, 1  ;;  %vm341_vm0 = vcmask 261120   ;;  %v306_v6 = vlaneseq }
  0x17   : > { %377 = vmatprep.mubr.bf16.mxu0 %v912_v0  ;;  %s1158_s12 = smov (!%p291_p13, %s663_s12), 31  ;;  %s1160_s15 = smov (!%p276_p0, %s658_s15), 3 }
  0x18   : > { %s688_s14 = sshll.u32 %s282_s13, 5  ;;  %s664_s27 = sshll.u32 %s1158_s12, 2  ;;  %v307_v7 = vshrl.u32 %v306_v6, 7 }
  0x19   : > { %s285_s26 = scalar_lea.vmem %s1129_s1, %s688_s14  ;;  %s1032_s29 = scalar_lea.vmem %s1131_s3, %s664_s27 }
  0x1a   : > { %v795_v1 = vld [vmem:[%s285_s26 + $0x14] ss:$8 sps:$4 sm:$0xff]   ;;  %v797_v2 = vld [vmem:[%s285_s26 + $0x10] ss:$8 sps:$4 sm:$0xff]   ;;  %v798_v3 = vld [vmem:[%s285_s26 + $0x4] ss:$8 sps:$4 sm:$0xff]  }
  0x1b   : > { %357 = vmatprep.subr.bf16.mxu0 %v795_v1  ;;  %v800_v4 = vld [vmem:[%s285_s26] ss:$8 sps:$4 sm:$0xff]   ;;  %s659_s10 = sshll.u32 %s1160_s15, 2  ;;  %s662_s12 = sshll.u32 %s282_s13, 1  ;;  %v308_v8 = vsub.s32 0, %v307_v7  ;;  %v312_v22 = vsub.s32 1, %v307_v7 }
  0x1c   : > { %358 = vmatpush1.bf16.msra.mxu0 %v797_v2  ;;  %s279_s14 = scalar_lea.vmem %s1128_s0, %s659_s10  ;;  %s289_s27 = scalar_lea.vmem %s1130_s2, %s662_s12 }
  0x1d   : > { %359 = vmatprep.subr.bf16.mxu0 %v798_v3  ;;  %v801_v5 = vld [vmem:[%s279_s14] sm:$0xff]   ;;  %s1042_s24 = scalar_lea.vmem [#allocation2], %s1021_s11  ;;  %p673_p1 = scmp.ne.s32.totalorder %s894_s21, 0 }
  0x1e   : > { %v304_v9 = vld [vmem:[%s289_s27] sm:$0x3] }
  0x1f   : > { %v309_v10 = vrot.slane %v304_v9, %v308_v8  ;;  %v313_v23 = vrot.slane %v304_v9, %v312_v22 }
  0x20   : > { %360 = vmatpush1.bf16.msra.mxu0 %v800_v4 }
  0x23   : > { %670 = vmatmul.mubr.msk.bf16.vlgmr.msra.gmra.mxu0 %vm341_vm0, %v801_v5 }
  0xe3   : > { %v379_v11 = vpop.f32.mrf.mxu0 }
  0xe4   : > { %v380_v12 = vadd.f32 %v379_v11, %v309_v10 }
  0xe5   : > { %v381_v13 = vpop.f32.mrf.mxu0 }
  0xe6   : > { %v671_v14 = vmul.f32 -1.442695, %v380_v12  ;;  %v382_v26 = vadd.f32 %v381_v13, %v313_v23 }
  0xe7   : > { %v383_v15 = vpop.f32.mrf.mxu0 }
  0xe8   : > { %802 = vpow2.f32 %v671_v14  ;;  %v384_v16 = vadd.f32 %v383_v15, %v309_v10 }
  0xe9   : > { %v385_v27 = vpop.f32.mrf.mxu0 }
  0xea   : > { %v672_v17 = vmul.f32 -1.442695, %v384_v16  ;;  %v386_v31 = vadd.f32 %v385_v27, %v313_v23 }
  0xec   : > { %804 = vpow2.f32 %v672_v17 }
  0xf5   : > { %v803_v18 = vpop.eup %802 }
  0xf6   : > { %v394_v19 = vadd.f32 1.0, %v803_v18 }
  0xf8   : > { %806 = vrcp.f32 %v394_v19 }
  0xf9   : > { %v805_v20 = vpop.eup %804 }
  0xfa   : > { %v395_v21 = vadd.f32 1.0, %v805_v20 }
  0xfc   : > { %808 = vrcp.f32 %v395_v21 }
 0x105   : > { %v807_v24 = vpop.eup %806 }
 0x106   : > { %v400_v25 = vmul.f32 %v807_v24, %v380_v12 }
 0x108   : > { %v402_v28 = vmul.f32 %v400_v25, %v382_v26  ;;  %407 = sbr.rel (%p673_p1) target bundleno = 271 (0x10f), region = 44 }
 0x109   : > { %v809_v29 = vpop.eup %808 }
 0x10a   : > { %v401_v30 = vmul.f32 %v809_v29, %v384_v16 }
 0x10c   : > { %v403_v32 = vmul.f32 %v401_v30, %v386_v31 }
 0x10d   : > { %v674_v33 = vld [vmem:[%s1132_s4] ss:$0 sm:$0xff] }
 0x10e   : > { %415 = vst.msk [vmem:[%s1042_s24] sm:$0xff] %vm341_vm0, %v674_v33  ;;  %416 = vst.msk [vmem:[%s1042_s24 + $0x8] sm:$0xff] %vm341_vm0, %v674_v33 }
 0x10f PF: > { %v810_v34 = vld [vmem:[%s1032_s29 + $0x38] sm:$0xff]   ;;  %v913_v35 = vmov 0.0   ;;  %v811_v36 = vld [vmem:[%s1032_s29 + $0x30] sm:$0xff]   ;;  %vm914_vm1 = vmmov 0   ;;  %v812_v37 = vld [vmem:[%s1032_s29 + $0x28] sm:$0xff]   ;;  %v419_v43 = vpack.c.bf16 %v403_v32, %v402_v28  ;;  %s689_s21 = sshll.u32 %s898_s22, 8 }
 0x110   : > { %699 = vmatprep.subr.bf16.mxu1 %v913_v35  ;;  %715 = vmatprep.mubr.msk.bf16.mxu1 %vm914_vm1, %v913_v35  ;;  %v813_v38 = vld [vmem:[%s1032_s29 + $0x20] sm:$0xff]   ;;  %v814_v39 = vld [vmem:[%s1032_s29 + $0x18] sm:$0xff]   ;;  %v815_v40 = vld [vmem:[%s1032_s29 + $0x10] sm:$0xff]   ;;  %s543_s11 = sshll.u32 %s1042_s24, 4  ;;  %s1142_s22 = sand.u32 1, %s886_s19   ;;  %s1071_s11 = int_to_ptr.vmem [resolvable:$true] %s543_s11 }
 0x111   : > { %700 = vmatpush3.bf16.msra.mxu1 %v810_v34  ;;  %v816_v41 = vld [vmem:[%s1032_s29 + $0x8] sm:$0xff]   ;;  %v817_v42 = vld [vmem:[%s1032_s29] sm:$0xff]   ;;  %s1069_s29 = scalar_lea.hbm %s1133_s5, %s689_s21  ;;  %s1077_s26 = scalar_lea.sflag [#allocation3], %s1142_s22 }
 0x112   : > { %701 = vmatprep.subr.bf16.mxu1 %v913_v35  ;;  %s818_s7 = scalar_lea.vmem %s1071_s11, 256  ;;  %s915_s8 = smov [#allocation2]  }
 0x113   : > { %p819_p2 = scmp.ne.s32.totalorder %s1071_s11, %s818_s7  ;;  %s822_s14 = sshll.u32 %s915_s8, 4  ;;  %s823_s14 = int_to_ptr.vmem [resolvable:$false] %s822_s14 }
 0x114   : > { %s824_s12 = scalar_lea.vmem %s823_s14, 512  ;;  %p825_p6 = scmp.lt.s32.totalorder %s1071_s11, %s823_s14 }
 0x115   : > { %702 = vmatpush3.bf16.msra.mxu1 %v811_v36  ;;  %v417_v44 = vld [vmem:[%s1042_s24] sm:$0xff]  ;;  %v418_v48 = vld [vmem:[%s1042_s24 + $0x8] sm:$0xff]  ;;  %p820_p4 = pnand %p819_p2, %p997_p3  ;;  %p826_p7 = scmp.lt.s32.totalorder %s824_s12, %s818_s7 }
 0x116   : > { %703 = vmatprep.subr.bf16.mxu1 %v913_v35 }
 0x117   : > { %p821_p5 = pneg %p820_p4  ;;  %p827_p8 = por %p826_p7, %p825_p6 }
 0x119   : > { %704 = vmatpush3.bf16.msra.mxu1 %v812_v37  ;;  %p828_p10 = pnand %p827_p8, %p821_p5 }
 0x11a   : > { %705 = vmatprep.subr.bf16.mxu1 %v913_v35 }
 0x11d   : > { %706 = vmatpush3.bf16.msra.mxu1 %v813_v38 }
 0x11e   : > { %707 = vmatprep.subr.bf16.mxu1 %v913_v35 }
 0x121   : > { %708 = vmatpush3.bf16.msra.mxu1 %v814_v39 }
 0x122   : > { %709 = vmatprep.subr.bf16.mxu1 %v913_v35 }
 0x125   : > { %710 = vmatpush3.bf16.msra.mxu1 %v815_v40 }
 0x126   : > { %711 = vmatprep.subr.bf16.mxu1 %v913_v35 }
 0x129   : > { %712 = vmatpush3.bf16.msra.mxu1 %v816_v41 }
 0x12a   : > { %713 = vmatprep.subr.bf16.mxu1 %v913_v35 }
 0x12d   : > { %714 = vmatpush3.bf16.msra.mxu1 %v817_v42 }
 0x130   : > { %716 = vmatmul.mubr.bf16.vlgmr.msra.gmra.mxu1 %v419_v43 }
 0x1f0   : > { %v518_v45 = vpop.f32.mrf.mxu1 }
 0x1f1   : > { %v525_v46 = vadd.f32 %v518_v45, %v417_v44 }
 0x1f2   : > { %v717_v47 = vpop.f32.mrf.mxu1 }
 0x1f3   : > { %527 = vst.msk [vmem:[%s1042_s24] sm:$0xff] %vm341_vm0, %v525_v46 }
 0x1f4   : > { %v521_v49 = vpop.f32.mrf.mxu1 }
 0x1f5   : > { %v526_v50 = vadd.f32 %v521_v49, %v418_v48 }
 0x1f6   : > { %v718_v51 = vpop.f32.mrf.mxu1 }
 0x1f7   : > { %528 = vst.msk [vmem:[%s1042_s24 + $0x8] sm:$0xff] %vm341_vm0, %v526_v50 }
 0x1f8   : > { %831 = shalt.err (!%p828_p10)
}
 0x1f9   : > { %s832_s16 = scalar_lea.hbm %s1069_s29, 256  ;;  %s836_s24 = scalar_lea.hbm %s1133_s5, 512 }
 0x1fa   : > { %p833_p11 = scmp.ne.s32.totalorder %s1069_s29, %s832_s16  ;;  %p837_p0 = scmp.lt.s32.totalorder %s1069_s29, %s1133_s5 }
 0x1fb   : > { %p838_p1 = scmp.lt.s32.totalorder %s836_s24, %s832_s16 }
 0x1fc   : > { %p834_p12 = pnand %p833_p11, %p997_p3 }
 0x1fd   : > { %p839_p2 = por %p838_p1, %p837_p0 }
 0x1fe   : > { %p835_p13 = pneg %p834_p12 }
 0x200   : > { %p840_p4 = pnand %p839_p2, %p835_p13 }
 0x202   : > { %843 = shalt.err (!%p840_p4)
}
 0x203   : > { %s916_s21 = smov 128   ;;  %s917_s13 = smov 8  }
 0x204   : > { %719 = dma.vmem_to_hbm [thread:$0]  (%p997_p3), %s1071_s11, 256, %s1069_s29, %s1077_s26, %s916_s21, %s916_s21, %s917_s13  }
 0x205 PF: > { %p725_p5 = scmp.ge.s32.totalorder %s910_s25, 2  ;;  %s558_s15 = sand.u32 1, %s882_s18  }
 0x206   : > { %s559_s22 = scalar_lea.sflag [#allocation3], %s558_s15 }
 0x207   : > { %p722_p6 = pnand %p725_p5, %p1007_p9 }
 0x209   : > { %p723_p7 = pneg %p722_p6 }
 0x20b   : > { %877 = dma.done.wait (%p723_p7), %s559_s22, 256  }
 0x20c   : > { %879 = vsyncadd (%p723_p7), %s559_s22, 4294967040  ;;  %s18_s25 = sadd.s32 1, %s910_s25   ;;  %s1143_s22 = sld [smem:[#allocation5_spill]] }
 0x20d   : > { %p15_p8 = scmp.ge.s32.totalorder %s18_s25, 6   ;;  %s1144_s30 = sld [smem:[#allocation6_spill]] }
 0x20e   : > { %s1145_s24 = sld [smem:[#allocation7_spill]]  ;;  %s1146_s18 = smov %s886_s19 }
 0x20f   : > { %s1147_s19 = smov %s890_s20  ;;  %s1148_s20 = smov %s1015_s9 }
 0x210   : > { %s1149_s21 = smov %s902_s23  ;;  %17 = sbr.rel (!%p15_p8) target bundleno = 5 (0x5), region = 88 }
 0x213   : > { %s1150_s23 = smov %s1144_s30 }
 0x215   :  { %564 = vsyncpa [#allocation3], 1 }
 0x216   :  { %566 = vsyncpa [#allocation3 + $0x1], 1 }

</bundles_post_ra>
